<compile_context>
chip_gen: v7x
topology: tpu7x:2x2x1
jax: 0.10.0
libtpu: 0.0.40
codegen_flags: <defaults>
</compile_context>

<pallas_src>
import functools

import jax
import jax.numpy as jnp
from jax.experimental import pallas as pl
from jax.experimental.pallas import tpu as pltpu


def _round_up(x, m):
    return ((x + m - 1) // m) * m


def _coach_kernel(obs_ref, st_ref, w_ref, out_ref, *, z_dims, n_terms):
    # G[r, e*Z + j] = sum_k state_aug[r, k] * W_packed[k, e*Z + j]
    g = jnp.dot(st_ref[...], w_ref[...],
                preferred_element_type=jnp.float32)            # (tm, (E+1)*Z)
    obs = obs_ref[...].astype(jnp.float32)                     # (tm, E+1)

    # z[r, j] = sum_e obs_aug[r, e] * G[r, e*Z + j]
    acc = obs[:, 0:1] * g[:, 0:z_dims]
    for e in range(1, n_terms):                                # small, unrolled
        acc = acc + obs[:, e:e + 1] * g[:, e * z_dims:(e + 1) * z_dims]

    # ELU (alpha=1): x if x > 0 else exp(x) - 1  (exp arg clamped for safety)
    neg = jnp.exp(jnp.minimum(acc, 0.0)) - 1.0
    out_ref[...] = jnp.where(acc > 0, acc, neg).astype(out_ref.dtype)


def init_params(key, obs_dim, state_dims, z_dims, dtype=jnp.float32):
    """nn.Linear-style uniform init; weights stored as (in_features, out_features)."""
    keys = jax.random.split(key, 4)

    def linear(kw, kb, fan_in, fan_out):
        bound = 1.0 / jnp.sqrt(jnp.float32(fan_in))
        w = jax.random.uniform(kw, (fan_in, fan_out), dtype, -bound, bound)
        b = jax.random.uniform(kb, (1, fan_out), dtype, -bound, bound)
        return w, b

    w_hw, b_hw = linear(keys[0], keys[1], obs_dim, state_dims * z_dims)  # self.w1
    w_hb, b_hb = linear(keys[2], keys[3], obs_dim, z_dims)               # self.b1
    return dict(w_hw=w_hw, b_hw=b_hw, w_hb=w_hb, b_hb=b_hb)


def pack_params(params, obs_dim, state_dims, z_dims):
    """Pack both hypernet linears + biases into one (S+1, (E+1)*Z) matrix, once."""
    E, S, Z = obs_dim, state_dims, z_dims
    # w3[e, k, j]: e < E -> W_hw, e == E -> hyper-weight bias row
    w3 = jnp.concatenate([params["w_hw"], params["b_hw"]], axis=0).reshape(E + 1, S, Z)
    top = jnp.transpose(w3, (1, 0, 2)).reshape(S, (E + 1) * Z)           # [k, e*Z+j]
    wb = jnp.concatenate([params["w_hb"], params["b_hb"]], axis=0)       # (E+1, Z)
    bot = wb.reshape(1, (E + 1) * Z)                                     # [0, e*Z+j]
    return jnp.concatenate([top, bot], axis=0)                           # (S+1, (E+1)*Z)


def csrl_coach_forward(ep_state, obs, t, w_packed, *, state_dims, z_dims, tm=256):
    """ep_state: (b, T, state_dims); obs: (b, a, obs_dim). Returns (b*a, z_dims)."""
    b, a, e = obs.shape
    state_t = ep_state[:, t, :]                                  # (b, S)
    n = b * a
    dtype = obs.dtype

    obs2 = obs.reshape(n, e)
    # state.unsqueeze(1).repeat(1, a, 1).view(b*a, -1) — broadcast, not gather
    state_rep = jnp.broadcast_to(
        state_t[:, None, :], (b, a, state_dims)).reshape(n, state_dims)

    ones = jnp.ones((n, 1), dtype)
    obs_aug = jnp.concatenate([obs2, ones], axis=1)              # (n, E+1)
    st_aug = jnp.concatenate([state_rep, ones], axis=1)          # (n, S+1)

    # Row tiling: big tiles by default, shrink for tiny inputs so we don't over-pad.
    tm = _round_up(min(tm, _round_up(n, 8)), 8)
    n_pad = _round_up(n, tm)
    if n_pad != n:
        obs_aug = jnp.pad(obs_aug, ((0, n_pad - n), (0, 0)))
        st_aug = jnp.pad(st_aug, ((0, n_pad - n), (0, 0)))

    n_terms = e + 1
    kernel = functools.partial(_coach_kernel, z_dims=z_dims, n_terms=n_terms)

    out = pl.pallas_call(
        kernel,
        out_shape=jax.ShapeDtypeStruct((n_pad, z_dims), dtype),
        grid=(n_pad // tm,),
        in_specs=[
            pl.BlockSpec((tm, n_terms), lambda i: (i, 0)),
            pl.BlockSpec((tm, state_dims + 1), lambda i: (i, 0)),
            pl.BlockSpec(w_packed.shape, lambda i: (0, 0)),      # resident weights
        ],
        out_specs=pl.BlockSpec((tm, z_dims), lambda i: (i, 0)),
        compiler_params=pltpu.CompilerParams(
            dimension_semantics=("parallel",)),
    )(obs_aug, st_aug, w_packed)

    return out[:n]


def reference_forward(ep_state, obs, t, params, *, state_dims, z_dims):
    """Pure-JAX reference matching the PyTorch module literally."""
    b, a, e = obs.shape
    state_t = ep_state[:, t, :]
    obs2 = obs.reshape(b * a, e)
    state_rep = jnp.repeat(state_t, a, axis=0)
    w1 = (obs2 @ params["w_hw"] + params["b_hw"]).reshape(-1, state_dims, z_dims)
    b1 = obs2 @ params["w_hb"] + params["b_hb"]                  # (b*a, Z)
    z = jnp.einsum('rs,rsz->rz', state_rep, w1) + b1
    return jnp.where(z > 0, z, jnp.exp(z) - 1.0)                 # ELU


if __name__ == "__main__":
    # Shapes implied by the module (two_hyper_layers=False):
    #   n_agents=4, obs_input_dims=16, state_dims=48, z_dims=32, episode T=8.
    b, n_agents, obs_dim = 2, 4, 16
    state_dims, z_dims = 48, 32
    T, t = 8, 3

    key = jax.random.PRNGKey(0)
    k_state, k_obs, k_param = jax.random.split(key, 3)
    ep_state = jax.random.normal(k_state, (b, T, state_dims), dtype=jnp.float32)
    obs = jax.random.normal(k_obs, (b, n_agents, obs_dim), dtype=jnp.float32)
    params = init_params(k_param, obs_dim, state_dims, z_dims)
    w_packed = pack_params(params, obs_dim, state_dims, z_dims)  # once, off the hot path

    z = csrl_coach_forward(ep_state, obs, t, w_packed,
                           state_dims=state_dims, z_dims=z_dims)
    z = jax.block_until_ready(z)
    z_ref = reference_forward(ep_state, obs, t, params,
                              state_dims=state_dims, z_dims=z_dims)
    assert z.shape == (b * n_agents, z_dims)
    assert jnp.allclose(z, z_ref, atol=1e-4, rtol=1e-4)

    # Second check: row count not a multiple of the tile + multi-step grid (padding path).
    b2, a2 = 6, 5
    k2s, k2o = jax.random.split(jax.random.PRNGKey(1))
    ep_state2 = jax.random.normal(k2s, (b2, T, state_dims), dtype=jnp.float32)
    obs_b2 = jax.random.normal(k2o, (b2, a2, obs_dim), dtype=jnp.float32)
    z2 = csrl_coach_forward(ep_state2, obs_b2, t, w_packed,
                            state_dims=state_dims, z_dims=z_dims, tm=8)
    z2 = jax.block_until_ready(z2)
    z2_ref = reference_forward(ep_state2, obs_b2, t, params,
                               state_dims=state_dims, z_dims=z_dims)
    assert z2.shape == (b2 * a2, z_dims)
    assert jnp.allclose(z2, z2_ref, atol=1e-4, rtol=1e-4)

    print("KERNEL_OK")
</pallas_src>

<mosaic_0001>
module attributes {stable_mosaic.version = 11 : i64} {
  func.func @_coach_kernel(%arg0: i32, %arg1: memref<8x17xf32, #tpu.memory_space<vmem>>, %arg2: memref<8x49xf32, #tpu.memory_space<vmem>>, %arg3: memref<49x544xf32, #tpu.memory_space<vmem>>, %arg4: memref<8x32xf32, #tpu.memory_space<vmem>>) attributes {dimension_semantics = [#tpu.dimension_semantics<parallel>], iteration_bounds = array<i64: 1>, scalar_prefetch = 0 : i64, scratch_operands = 0 : i64, tpu.core_type = #tpu.core_type<tc>, window_params = [{transform_indices = @transform_0, window_bounds = array<i64: 8, 17>}, {transform_indices = @transform_1, window_bounds = array<i64: 8, 49>}, {pipeline_mode = #tpu.pipeline_mode<synchronous>, transform_indices = @transform_2, window_bounds = array<i64: 49, 544>}, {transform_indices = @transform_3, window_bounds = array<i64: 8, 32>}]} {
    %c0 = arith.constant 0 : index
    %c0_0 = arith.constant 0 : index
    %0 = vector.load %arg2[%c0, %c0_0] : memref<8x49xf32, #tpu.memory_space<vmem>>, vector<8x49xf32>
    %c0_1 = arith.constant 0 : index
    %c0_2 = arith.constant 0 : index
    %1 = vector.load %arg3[%c0_1, %c0_2] : memref<49x544xf32, #tpu.memory_space<vmem>>, vector<49x544xf32>
    %cst = arith.constant dense<0.000000e+00> : vector<8x544xf32>
    %2 = tpu.matmul %0, %1, %cst {dimension_numbers = #tpu.dot_dimension_numbers<[1], [0], [0], [1], [0, 0, 1, 1], [], []>} : vector<8x49xf32>, vector<49x544xf32>, vector<8x544xf32> -> vector<8x544xf32>
    %c0_3 = arith.constant 0 : index
    %c0_4 = arith.constant 0 : index
    %3 = vector.load %arg1[%c0_3, %c0_4] : memref<8x17xf32, #tpu.memory_space<vmem>>, vector<8x17xf32>
    %4 = vector.extract_strided_slice %3 {offsets = [0, 0], sizes = [8, 1], strides = [1, 1]} : vector<8x17xf32> to vector<8x1xf32>
    %5 = vector.extract_strided_slice %2 {offsets = [0, 0], sizes = [8, 32], strides = [1, 1]} : vector<8x544xf32> to vector<8x32xf32>
    %6 = vector.broadcast %4 : vector<8x1xf32> to vector<8x32xf32>
    %7 = arith.mulf %6, %5 : vector<8x32xf32>
    %8 = vector.extract_strided_slice %3 {offsets = [0, 1], sizes = [8, 1], strides = [1, 1]} : vector<8x17xf32> to vector<8x1xf32>
    %9 = vector.extract_strided_slice %2 {offsets = [0, 32], sizes = [8, 32], strides = [1, 1]} : vector<8x544xf32> to vector<8x32xf32>
    %10 = vector.broadcast %8 : vector<8x1xf32> to vector<8x32xf32>
    %11 = arith.mulf %10, %9 : vector<8x32xf32>
    %12 = arith.addf %7, %11 : vector<8x32xf32>
    %13 = vector.extract_strided_slice %3 {offsets = [0, 2], sizes = [8, 1], strides = [1, 1]} : vector<8x17xf32> to vector<8x1xf32>
    %14 = vector.extract_strided_slice %2 {offsets = [0, 64], sizes = [8, 32], strides = [1, 1]} : vector<8x544xf32> to vector<8x32xf32>
    %15 = vector.broadcast %13 : vector<8x1xf32> to vector<8x32xf32>
    %16 = arith.mulf %15, %14 : vector<8x32xf32>
    %17 = arith.addf %12, %16 : vector<8x32xf32>
    %18 = vector.extract_strided_slice %3 {offsets = [0, 3], sizes = [8, 1], strides = [1, 1]} : vector<8x17xf32> to vector<8x1xf32>
    %19 = vector.extract_strided_slice %2 {offsets = [0, 96], sizes = [8, 32], strides = [1, 1]} : vector<8x544xf32> to vector<8x32xf32>
    %20 = vector.broadcast %18 : vector<8x1xf32> to vector<8x32xf32>
    %21 = arith.mulf %20, %19 : vector<8x32xf32>
    %22 = arith.addf %17, %21 : vector<8x32xf32>
    %23 = vector.extract_strided_slice %3 {offsets = [0, 4], sizes = [8, 1], strides = [1, 1]} : vector<8x17xf32> to vector<8x1xf32>
    %24 = vector.extract_strided_slice %2 {offsets = [0, 128], sizes = [8, 32], strides = [1, 1]} : vector<8x544xf32> to vector<8x32xf32>
    %25 = vector.broadcast %23 : vector<8x1xf32> to vector<8x32xf32>
    %26 = arith.mulf %25, %24 : vector<8x32xf32>
    %27 = arith.addf %22, %26 : vector<8x32xf32>
    %28 = vector.extract_strided_slice %3 {offsets = [0, 5], sizes = [8, 1], strides = [1, 1]} : vector<8x17xf32> to vector<8x1xf32>
    %29 = vector.extract_strided_slice %2 {offsets = [0, 160], sizes = [8, 32], strides = [1, 1]} : vector<8x544xf32> to vector<8x32xf32>
    %30 = vector.broadcast %28 : vector<8x1xf32> to vector<8x32xf32>
    %31 = arith.mulf %30, %29 : vector<8x32xf32>
    %32 = arith.addf %27, %31 : vector<8x32xf32>
    %33 = vector.extract_strided_slice %3 {offsets = [0, 6], sizes = [8, 1], strides = [1, 1]} : vector<8x17xf32> to vector<8x1xf32>
    %34 = vector.extract_strided_slice %2 {offsets = [0, 192], sizes = [8, 32], strides = [1, 1]} : vector<8x544xf32> to vector<8x32xf32>
    %35 = vector.broadcast %33 : vector<8x1xf32> to vector<8x32xf32>
    %36 = arith.mulf %35, %34 : vector<8x32xf32>
    %37 = arith.addf %32, %36 : vector<8x32xf32>
    %38 = vector.extract_strided_slice %3 {offsets = [0, 7], sizes = [8, 1], strides = [1, 1]} : vector<8x17xf32> to vector<8x1xf32>
    %39 = vector.extract_strided_slice %2 {offsets = [0, 224], sizes = [8, 32], strides = [1, 1]} : vector<8x544xf32> to vector<8x32xf32>
    %40 = vector.broadcast %38 : vector<8x1xf32> to vector<8x32xf32>
    %41 = arith.mulf %40, %39 : vector<8x32xf32>
    %42 = arith.addf %37, %41 : vector<8x32xf32>
    %43 = vector.extract_strided_slice %3 {offsets = [0, 8], sizes = [8, 1], strides = [1, 1]} : vector<8x17xf32> to vector<8x1xf32>
    %44 = vector.extract_strided_slice %2 {offsets = [0, 256], sizes = [8, 32], strides = [1, 1]} : vector<8x544xf32> to vector<8x32xf32>
    %45 = vector.broadcast %43 : vector<8x1xf32> to vector<8x32xf32>
    %46 = arith.mulf %45, %44 : vector<8x32xf32>
    %47 = arith.addf %42, %46 : vector<8x32xf32>
    %48 = vector.extract_strided_slice %3 {offsets = [0, 9], sizes = [8, 1], strides = [1, 1]} : vector<8x17xf32> to vector<8x1xf32>
    %49 = vector.extract_strided_slice %2 {offsets = [0, 288], sizes = [8, 32], strides = [1, 1]} : vector<8x544xf32> to vector<8x32xf32>
    %50 = vector.broadcast %48 : vector<8x1xf32> to vector<8x32xf32>
    %51 = arith.mulf %50, %49 : vector<8x32xf32>
    %52 = arith.addf %47, %51 : vector<8x32xf32>
    %53 = vector.extract_strided_slice %3 {offsets = [0, 10], sizes = [8, 1], strides = [1, 1]} : vector<8x17xf32> to vector<8x1xf32>
    %54 = vector.extract_strided_slice %2 {offsets = [0, 320], sizes = [8, 32], strides = [1, 1]} : vector<8x544xf32> to vector<8x32xf32>
    %55 = vector.broadcast %53 : vector<8x1xf32> to vector<8x32xf32>
    %56 = arith.mulf %55, %54 : vector<8x32xf32>
    %57 = arith.addf %52, %56 : vector<8x32xf32>
    %58 = vector.extract_strided_slice %3 {offsets = [0, 11], sizes = [8, 1], strides = [1, 1]} : vector<8x17xf32> to vector<8x1xf32>
    %59 = vector.extract_strided_slice %2 {offsets = [0, 352], sizes = [8, 32], strides = [1, 1]} : vector<8x544xf32> to vector<8x32xf32>
    %60 = vector.broadcast %58 : vector<8x1xf32> to vector<8x32xf32>
    %61 = arith.mulf %60, %59 : vector<8x32xf32>
    %62 = arith.addf %57, %61 : vector<8x32xf32>
    %63 = vector.extract_strided_slice %3 {offsets = [0, 12], sizes = [8, 1], strides = [1, 1]} : vector<8x17xf32> to vector<8x1xf32>
    %64 = vector.extract_strided_slice %2 {offsets = [0, 384], sizes = [8, 32], strides = [1, 1]} : vector<8x544xf32> to vector<8x32xf32>
    %65 = vector.broadcast %63 : vector<8x1xf32> to vector<8x32xf32>
    %66 = arith.mulf %65, %64 : vector<8x32xf32>
    %67 = arith.addf %62, %66 : vector<8x32xf32>
    %68 = vector.extract_strided_slice %3 {offsets = [0, 13], sizes = [8, 1], strides = [1, 1]} : vector<8x17xf32> to vector<8x1xf32>
    %69 = vector.extract_strided_slice %2 {offsets = [0, 416], sizes = [8, 32], strides = [1, 1]} : vector<8x544xf32> to vector<8x32xf32>
    %70 = vector.broadcast %68 : vector<8x1xf32> to vector<8x32xf32>
    %71 = arith.mulf %70, %69 : vector<8x32xf32>
    %72 = arith.addf %67, %71 : vector<8x32xf32>
    %73 = vector.extract_strided_slice %3 {offsets = [0, 14], sizes = [8, 1], strides = [1, 1]} : vector<8x17xf32> to vector<8x1xf32>
    %74 = vector.extract_strided_slice %2 {offsets = [0, 448], sizes = [8, 32], strides = [1, 1]} : vector<8x544xf32> to vector<8x32xf32>
    %75 = vector.broadcast %73 : vector<8x1xf32> to vector<8x32xf32>
    %76 = arith.mulf %75, %74 : vector<8x32xf32>
    %77 = arith.addf %72, %76 : vector<8x32xf32>
    %78 = vector.extract_strided_slice %3 {offsets = [0, 15], sizes = [8, 1], strides = [1, 1]} : vector<8x17xf32> to vector<8x1xf32>
    %79 = vector.extract_strided_slice %2 {offsets = [0, 480], sizes = [8, 32], strides = [1, 1]} : vector<8x544xf32> to vector<8x32xf32>
    %80 = vector.broadcast %78 : vector<8x1xf32> to vector<8x32xf32>
    %81 = arith.mulf %80, %79 : vector<8x32xf32>
    %82 = arith.addf %77, %81 : vector<8x32xf32>
    %83 = vector.extract_strided_slice %3 {offsets = [0, 16], sizes = [8, 1], strides = [1, 1]} : vector<8x17xf32> to vector<8x1xf32>
    %84 = vector.extract_strided_slice %2 {offsets = [0, 512], sizes = [8, 32], strides = [1, 1]} : vector<8x544xf32> to vector<8x32xf32>
    %85 = vector.broadcast %83 : vector<8x1xf32> to vector<8x32xf32>
    %86 = arith.mulf %85, %84 : vector<8x32xf32>
    %87 = arith.addf %82, %86 : vector<8x32xf32>
    %cst_5 = arith.constant 0.000000e+00 : f32
    %88 = vector.broadcast %cst_5 : f32 to vector<8x32xf32>
    %89 = arith.minimumf %87, %88 : vector<8x32xf32>
    %90 = math.exp %89 : vector<8x32xf32>
    %cst_6 = arith.constant 1.000000e+00 : f32
    %91 = vector.broadcast %cst_6 : f32 to vector<8x32xf32>
    %92 = arith.subf %90, %91 : vector<8x32xf32>
    %cst_7 = arith.constant 0.000000e+00 : f32
    %93 = vector.broadcast %cst_7 : f32 to vector<8x32xf32>
    %94 = arith.cmpf ogt, %87, %93 : vector<8x32xf32>
    %95 = arith.select %94, %87, %92 : vector<8x32xi1>, vector<8x32xf32>
    %c0_8 = arith.constant 0 : index
    %c0_9 = arith.constant 0 : index
    %96 = vector.load %arg4[%c0_8, %c0_9] : memref<8x32xf32, #tpu.memory_space<vmem>>, vector<8x32xf32>
    tpu.vector_store %arg4[%c0_8, %c0_9], %95 {strides = array<i32>} : memref<8x32xf32, #tpu.memory_space<vmem>>, vector<8x32xf32>,
    return
  }
  func.func @transform_0(%arg0: i32) -> (i32, i32) {
    %c0_i32 = arith.constant 0 : i32
    %c0_i32_0 = arith.constant 0 : i32
    return %arg0, %c0_i32 : i32, i32
  }
  func.func @transform_1(%arg0: i32) -> (i32, i32) {
    %c0_i32 = arith.constant 0 : i32
    %c0_i32_0 = arith.constant 0 : i32
    return %arg0, %c0_i32 : i32, i32
  }
  func.func @transform_2(%arg0: i32) -> (i32, i32) {
    %c0_i32 = arith.constant 0 : i32
    %c0_i32_0 = arith.constant 0 : i32
    %c0_i32_1 = arith.constant 0 : i32
    return %c0_i32, %c0_i32_0 : i32, i32
  }
  func.func @transform_3(%arg0: i32) -> (i32, i32) {
    %c0_i32 = arith.constant 0 : i32
    %c0_i32_0 = arith.constant 0 : i32
    return %arg0, %c0_i32 : i32, i32
  }
}

</mosaic_0001>

<bundles_post_ra>
// kernel: tpu_custom_call.1
= control target key start
LH: loop header
LB: loop body
LE: loop exit
PB: predicated region body
PF: predicated region fallthrough
CT: control target
= control target key end

     0   :  { %8 = vsyncpa [#allocation3], 0  ;;  %s845_s0 = inlined_call_operand.hbm [shape: f32[8,17], index: 0, kind: input, shape index: {}]   ;;  %s846_s1 = inlined_call_operand.hbm [shape: f32[8,49], index: 1, kind: input, shape index: {}]   ;;  %s847_s2 = inlined_call_operand.hbm [shape: f32[49,544], index: 2, kind: input, shape index: {}]   ;;  %s848_s3 = inlined_call_operand.hbm [shape: f32[8,32], index: 3, kind: output, shape index: {}]  }
   0x1   :  { %9 = vsyncpa [#allocation6], 0 }
   0x2   :  { %10 = vsyncpa [#allocation4], 0  ;;  %s705_s12 = smov [#allocation5]   ;;  %s706_s14 = smov [#allocation2]  }
   0x3   :  { %s27_s13 = sshll.u32 %s705_s12, 4  ;;  %s17_s15 = sshll.u32 %s706_s14, 4  ;;  %s28_s13 = int_to_ptr.vmem [resolvable:$true] %s27_s13  ;;  %s18_s15 = int_to_ptr.vmem [resolvable:$true] %s17_s15 }
   0x4   :  { %s611_s18 = scalar_lea.hbm %s846_s1, 128 }
   0x5   :  { %p612_p0 = scmp.ne.s32.totalorder %s846_s1, %s611_s18  ;;  %p615_p1 = scmp.lt.u32.totalorder %s611_s18, %s846_s1 }
   0x7   :  { %p617_p2 = pnand %p615_p1, %p612_p0 }
   0x9   :  { %620 = shalt.err (!%p617_p2)
}
   0xa   :  { %s621_s23 = scalar_lea.vmem %s28_s13, 128  ;;  %p626_p4 = scmp.lt.s32.totalorder %s28_s13, %s28_s13 }
   0xb   :  { %p622_p3 = scmp.ne.s32.totalorder %s28_s13, %s621_s23  ;;  %p627_p5 = scmp.lt.s32.totalorder %s621_s23, %s621_s23 }
   0xd   :  { %p628_p6 = por %p627_p5, %p626_p4 }
   0xf   :  { %p629_p7 = pnand %p628_p6, %p622_p3 }
  0x11   :  { %632 = shalt.err (!%p629_p7)
}
  0x12   :  { %30 = dma.hbm_to_vmem [thread:$0]  %s846_s1, 128, %s28_s13, [#allocation6]  }
  0x13   :  { %s633_s28 = scalar_lea.hbm %s845_s0, 128 }
  0x14   :  { %p634_p8 = scmp.ne.s32.totalorder %s845_s0, %s633_s28  ;;  %p637_p9 = scmp.lt.u32.totalorder %s633_s28, %s845_s0 }
  0x16   :  { %p639_p10 = pnand %p637_p9, %p634_p8 }
  0x18   :  { %642 = shalt.err (!%p639_p10)
}
  0x19   :  { %s643_s6 = scalar_lea.vmem %s18_s15, 128  ;;  %p648_p12 = scmp.lt.s32.totalorder %s18_s15, %s18_s15 }
  0x1a   :  { %p644_p11 = scmp.ne.s32.totalorder %s18_s15, %s643_s6  ;;  %p649_p13 = scmp.lt.s32.totalorder %s643_s6, %s643_s6 }
  0x1c   :  { %p650_p0 = por %p649_p13, %p648_p12 }
  0x1e   :  { %p651_p1 = pnand %p650_p0, %p644_p11 }
  0x20   :  { %654 = shalt.err (!%p651_p1)
}
  0x21   :  { %20 = dma.hbm_to_vmem [thread:$0]  %s845_s0, 128, %s18_s15, [#allocation3]  }
  0x22   :  { %s707_s8 = smov [#allocation7]   ;;  %s655_s12 = scalar_lea.hbm %s847_s2, 4480 }
  0x23   :  { %s36_s9 = sshll.u32 %s707_s8, 4  ;;  %p656_p2 = scmp.ne.s32.totalorder %s847_s2, %s655_s12  ;;  %s37_s9 = int_to_ptr.vmem [resolvable:$true] %s36_s9 }
  0x24   :  { %p659_p3 = scmp.lt.u32.totalorder %s655_s12, %s847_s2 }
  0x26   :  { %p661_p4 = pnand %p659_p3, %p656_p2 }
  0x28   :  { %664 = shalt.err (!%p661_p4)
}
  0x29   :  { %s665_s18 = scalar_lea.vmem %s37_s9, 4480  ;;  %p670_p6 = scmp.lt.s32.totalorder %s37_s9, %s37_s9 }
  0x2a   :  { %p666_p5 = scmp.ne.s32.totalorder %s37_s9, %s665_s18  ;;  %p671_p7 = scmp.lt.s32.totalorder %s665_s18, %s665_s18 }
  0x2c   :  { %p672_p8 = por %p671_p7, %p670_p6 }
  0x2e   :  { %p673_p9 = pnand %p672_p8, %p666_p5 }
  0x30   :  { %676 = shalt.err (!%p673_p9)
}
  0x31   :  { %s708_s0 = smov 640   ;;  %s709_s15 = smov 40  }
  0x32   :  { %42 = dma.hbm_to_vmem [thread:$0]  %s847_s2, 4480, %s37_s9, [#allocation6], %s708_s0, %s708_s0, %s709_s15  }
  0x33   :  { %699 = dma.done.wait [#allocation3], 128  }
  0x34   :  { %700 = vsyncadd [#allocation3], 4294967168 }
  0x35   :  { %701 = dma.done.wait [#allocation6], 4608  }
  0x36   :  { %702 = vsyncadd [#allocation6], 4294962688  ;;  %v710_v0 = vmov 0.0   ;;  %v711_v1 = vmov 3   ;;  %v712_v2 = vmov 1   ;;  %v54_v3 = vld [vmem:[#allocation7 + $0x8] sm:$0xff] }
  0x37   :  { %172 = vmatprep.mubr.f32.mxu0 %v710_v0  ;;  %243 = vmatprep.mubr.f32.mxu1 %v710_v0  ;;  %v59_v4 = vld [vmem:[#allocation7 + $0x30] sm:$0xff]  ;;  %v53_v5 = vld [vmem:[#allocation7] sm:$0xff]  ;;  %v58_v7 = vld [vmem:[#allocation7 + $0x28] sm:$0xff]  ;;  %vm92_vm0 = vcmask 1040384   ;;  %vm88_vm1 = vcmask 400384   ;;  %v713_v44 = vmov 5  }
  0x38   :  { %593 = vset.pattern.permute.xlu1 %v711_v1  ;;  %591 = vset.pattern.permute.xlu0 %v712_v2  ;;  %v529_v6 = vpack.c.bf16 %v59_v4, %v54_v3  ;;  %v64_v8 = vld [vmem:[#allocation7 + $0x58] sm:$0xff]  ;;  %v69_v9 = vld [vmem:[#allocation7 + $0x80] sm:$0xff]  ;;  %v531_v10 = vpack.c.bf16 %v58_v7, %v53_v5  ;;  %v63_v12 = vld [vmem:[#allocation7 + $0x50] sm:$0xff]  ;;  %v714_v45 = vmov 2   ;;  %v715_v49 = vmov 0.0|0.0   ;;  %s729_s2 = smov 64  }
  0x39   :  { %v533_v11 = vpack.c.bf16 %v69_v9, %v64_v8  ;;  %v68_v13 = vld [vmem:[#allocation7 + $0x78] sm:$0xff]  ;;  %v74_v14 = vld [vmem:[#allocation7 + $0xa8] sm:$0xff]  ;;  %v79_v15 = vld [vmem:[#allocation7 + $0xd0] sm:$0xff]  ;;  %vm716_vm2 = vmmov 0   ;;  %v717_v51 = vmov 6   ;;  %v718_v52 = vmov 7  }
  0x3a   :  { %530 = vmatprep.subr.bf16.mxu0 %v529_v6  ;;  %v535_v16 = vpack.c.bf16 %v68_v13, %v63_v12  ;;  %v73_v17 = vld [vmem:[#allocation7 + $0xa0] sm:$0xff]  ;;  %v56_v18 = vld [vmem:[#allocation7 + $0x18] sm:$0xff]  ;;  %v537_v20 = vpack.c.bf16 %v79_v15, %v74_v14  ;;  %v78_v21 = vld [vmem:[#allocation7 + $0xc8] sm:$0xff]  ;;  %v719_v56 = vmov 9   ;;  %v720_v59 = vmov 11   ;;  %s730_s21 = smov 96  }
  0x3b   :  { %532 = vmatpush1.bf16.msra.mxu0 %v531_v10  ;;  %v61_v19 = vld [vmem:[#allocation7 + $0x40] sm:$0xff]  ;;  %v55_v23 = vld [vmem:[#allocation7 + $0x10] sm:$0xff]  ;;  %v60_v24 = vld [vmem:[#allocation7 + $0x38] sm:$0xff]  ;;  %v539_v32 = vpack.c.bf16 %v78_v21, %v73_v17  ;;  %v721_v61 = vmov 10   ;;  %v722_v62 = vmov 15   ;;  %v723_v1 = vmov 13  }
  0x3c   :  { %534 = vmatprep.subr.bf16.mxu0 %v533_v11  ;;  %v541_v22 = vpack.c.bf16 %v61_v19, %v56_v18  ;;  %v543_v25 = vpack.c.bf16 %v60_v24, %v55_v23  ;;  %v66_v26 = vld [vmem:[#allocation7 + $0x68] sm:$0xff]  ;;  %v71_v27 = vld [vmem:[#allocation7 + $0x90] sm:$0xff]  ;;  %v65_v29 = vld [vmem:[#allocation7 + $0x60] sm:$0xff]  ;;  %v724_v2 = vmov 14   ;;  %v725_v3 = vmov 0   ;;  %s731_s22 = smov 32  }
  0x3d   :  { %v545_v28 = vpack.c.bf16 %v71_v27, %v66_v26  ;;  %v70_v30 = vld [vmem:[#allocation7 + $0x88] sm:$0xff]  ;;  %v76_v31 = vld [vmem:[#allocation7 + $0xb8] sm:$0xff]  ;;  %v81_v34 = vld [vmem:[#allocation7 + $0xe0] sm:$0xff]  ;;  %v726_v4 = vmov 4   ;;  %v728_v5 = vmov 16   ;;  %v732_v23 = vmov 12  }
  0x3e   :  { %542 = vmatprep.subr.bf16.mxu1 %v541_v22  ;;  %v547_v33 = vpack.c.bf16 %v70_v30, %v65_v29  ;;  %v549_v35 = vpack.c.bf16 %v81_v34, %v76_v31  ;;  %v75_v36 = vld [vmem:[#allocation7 + $0xb0] sm:$0xff]  ;;  %v80_v37 = vld [vmem:[#allocation7 + $0xd8] sm:$0xff]  ;;  %v86_v43 = vld [vmem:[#allocation7 + $0x108] sm:$0x1]  ;;  %s733_s23 = smov [#allocation8]   ;;  %vm477_vm3 = vcmask 261120  }
  0x3f   :  { %536 = vmatpush1.bf16.msra.mxu0 %v535_v16  ;;  %544 = vmatpush1.bf16.msra.mxu1 %v543_v25  ;;  %v792_v38 = vld [vmem:[#allocation2] sm:$0xff]  ;;  %v84_v39 = vld [vmem:[#allocation7 + $0xf8] sm:$0x1]  ;;  %v551_v40 = vpack.c.bf16 %v80_v37, %v75_v36  ;;  %v57_v46 = vld [vmem:[#allocation7 + $0x20] sm:$0xff]  ;;  %s485_s24 = sshll.u32 %s733_s23, 4  ;;  %s486_s24 = int_to_ptr.vmem [resolvable:$true] %s485_s24 }
  0x40   :  { %538 = vmatprep.subr.bf16.mxu0 %v537_v20  ;;  %546 = vmatprep.subr.bf16.mxu1 %v545_v28  ;;  %v83_v41 = vld [vmem:[#allocation7 + $0xf0] sm:$0x1]  ;;  %v52_v42 = vld [vmem:[#allocation5] sm:$0xff]  ;;  %v62_v47 = vld [vmem:[#allocation7 + $0x48] sm:$0xff]  ;;  %s677_s25 = scalar_lea.vmem %s486_s24, 128  ;;  %p682_p11 = scmp.lt.s32.totalorder %s486_s24, %s486_s24 }
  0x41   :  { %348 = vperm.xlu1 %593, %v792_v38   ;;  %328 = vperm.xlu0 %591, %v792_v38   ;;  %v85_v48 = vld [vmem:[#allocation7 + $0x100] sm:$0x1]  ;;  %v554_v50 = vpack.c.bf16 %v62_v47, %v57_v46  ;;  %v67_v53 = vld [vmem:[#allocation7 + $0x70] sm:$0xff]  ;;  %v72_v54 = vld [vmem:[#allocation7 + $0x98] sm:$0xff]  ;;  %p678_p10 = scmp.ne.s32.totalorder %s486_s24, %s677_s25  ;;  %p683_p12 = scmp.lt.s32.totalorder %s677_s25, %s677_s25 }
  0x42   :  { %v557_v55 = vpack.c.bf16 %v72_v54, %v67_v53  ;;  %v77_v57 = vld [vmem:[#allocation7 + $0xc0] sm:$0xff]  ;;  %v82_v58 = vld [vmem:[#allocation7 + $0xe8] sm:$0xff]  ;;  %v87_v63 = vld [vmem:[#allocation7 + $0x110] sm:$0x1] }
  0x43   :  { %540 = vmatpush1.bf16.msra.mxu0 %v539_v32  ;;  %548 = vmatpush1.bf16.msra.mxu1 %v547_v33  ;;  %v560_v60 = vpack.c.bf16 %v82_v58, %v77_v57  ;;  %p684_p13 = por %p683_p12, %p682_p11 }
  0x44   :  { %495 = vmatprep.subr.msk.mxu0 %vm92_vm0, %v84_v39  ;;  %550 = vmatprep.subr.bf16.mxu1 %v549_v35 }
  0x45   :  { %594 = vset.pattern.permute.xlu1 %v713_v44  ;;  %592 = vset.pattern.permute.xlu0 %v714_v45  ;;  %p685_p0 = pnand %p684_p13, %p678_p10 }
  0x46   :  { %364 = vperm.xlu1 %594, %v792_v38   ;;  %338 = vperm.xlu0 %592, %v792_v38  }
  0x47   :  { %496 = vmatpush1.msk.msra.mxu0 %vm92_vm0, %v83_v41  ;;  %552 = vmatpush1.bf16.msra.mxu1 %v551_v40 }
  0x48   :  { %497 = vmatmul.mubr.msk.f32.vlgmr.msra.gmra.mrb[0].mxu0 %vm88_vm1, %v52_v42  ;;  %498 = vmatprep.subr.msk.mxu1 %vm92_vm0, %v86_v43 }
  0x49   :  { %553 = vmatprep.subr.bf16.mxu0 %v715_v49  ;;  %526 = vmatprep.mubr.msk.f32.mxu0 %vm716_vm2, %v710_v0 }
  0x4a   :  { %595 = vset.pattern.permute.xlu1 %v717_v51  ;;  %596 = vset.pattern.permute.xlu0 %v718_v52 }
  0x4b   :  { %499 = vmatpush1.msk.msra.mxu1 %vm92_vm0, %v85_v48  ;;  %374 = vperm.xlu1 %595, %v792_v38  }
  0x4c   :  { %500 = vmatmul.mubr.msk.f32.vlgmr.msra.gmra.mrb[0].mxu1 %vm88_vm1, %v52_v42  ;;  %384 = vperm.xlu0 %596, %v792_v38  }
  0x4d   :  { %555 = vmatpush3.bf16.msra.mxu0 %v554_v50 }
  0x4e   :  { %556 = vmatprep.subr.bf16.mxu0 %v715_v49 }
  0x4f   :  { %597 = vset.pattern.permute.xlu1 %v719_v56 }
  0x50   :  { %400 = vperm.xlu1 %597, %v792_v38   ;;  %599 = vset.pattern.permute.xlu0 %v720_v59 }
  0x51   :  { %420 = vperm.xlu0 %599, %v792_v38   ;;  %558 = vmatpush3.bf16.msra.mxu0 %v557_v55 }
  0x52   :  { %559 = vmatprep.subr.bf16.mxu0 %v715_v49 }
  0x54   :  { %598 = vset.pattern.permute.xlu1 %v721_v61 }
  0x55   :  { %410 = vperm.xlu1 %598, %v792_v38   ;;  %602 = vset.pattern.permute.xlu0 %v722_v62 }
  0x56   :  { %456 = vperm.xlu0 %602, %v792_v38   ;;  %561 = vmatpush3.bf16.msra.mxu0 %v560_v60 }
  0x57   :  { %524 = vmatprep.subr.mxu0 %v710_v0  ;;  %v727_v0 = vmov 8  }
  0x59   :  { %600 = vset.pattern.permute.xlu1 %v723_v1 }
  0x5a   :  { %436 = vperm.xlu1 %600, %v792_v38   ;;  %525 = vmatpush3.msk.msra.mxu0 %vm92_vm0, %v87_v63 }
  0x5b   :  { %527 = vmatmul.mubr.msk.f32.vlgmr.msra.gmra.mrb[2].mxu0 %vm88_vm1, %v52_v42  ;;  %608 = vset.pattern.permute.xlu0 %v728_v5 }
  0x5e   :  { %601 = vset.pattern.permute.xlu1 %v724_v2 }
  0x5f   :  { %446 = vperm.xlu1 %601, %v792_v38  }
  0x63   :  { %603 = vset.pattern.permute.xlu1 %v725_v3 }
  0x64   :  { %323 = vperm.xlu1 %603, %v792_v38  }
  0x68   :  { %604 = vset.pattern.permute.xlu1 %v726_v4 }
  0x69   :  { %358 = vperm.xlu1 %604, %v792_v38  }
  0x6d   :  { %605 = vset.pattern.permute.xlu1 %v727_v0 }
  0xc0   :  { %v349_v6 = vpop.permute.xlu1 %348  ;;  %v329_v7 = vpop.permute.xlu0 %328 }
  0xc5   :  { %v365_v8 = vpop.permute.xlu1 %364  ;;  %v339_v9 = vpop.permute.xlu0 %338 }
  0xca   :  { %v375_v10 = vpop.permute.xlu1 %374 }
  0xcb   :  { %v385_v21 = vpop.permute.xlu0 %384 }
  0xcf   :  { %v401_v18 = vpop.permute.xlu1 %400 }
  0xd0   :  { %v421_v28 = vpop.permute.xlu0 %420 }
  0xd4   :  { %v411_v22 = vpop.permute.xlu1 %410 }
  0xd5   :  { %v457_v35 = vpop.permute.xlu0 %456 }
  0xd9   :  { %v437_v27 = vpop.permute.xlu1 %436 }
  0xde   :  { %v447_v32 = vpop.permute.xlu1 %446 }
  0xe3   :  { %v324_v37 = vpop.permute.xlu1 %323 }
  0xe8   :  { %v359_v39 = vpop.permute.xlu1 %358 }
 0x11b   :  { %v174_v11 = vpop.f32.mrb[0].mxu0 }
 0x11c   :  { %v176_v12 = vpop.f32.mrb[1].mxu0  ;;  %v341_v13 = vmul.f32 %v339_v9, %v174_v11  ;;  %v331_v14 = vmul.f32 %v329_v7, %v174_v11  ;;  %v351_v16 = vmul.f32 %v349_v6, %v174_v11  ;;  %v326_v40 = vmul.f32 %v324_v37, %v174_v11 }
 0x11d   :  { %v377_v19 = vmul.f32 %v375_v10, %v176_v12  ;;  %v367_v20 = vmul.f32 %v365_v8, %v176_v12  ;;  %v387_v24 = vmul.f32 %v385_v21, %v176_v12  ;;  %v361_v46 = vmul.f32 %v359_v39, %v176_v12 }
 0x11e   :  { %343 = vrot.lane.b32.xlu1 %v341_v13, %s729_s2  ;;  %333 = vrot.lane.b32.xlu0 %v331_v14, %s730_s21 }
 0x11f   :  { %v245_v15 = vpop.f32.mrb[0].mxu1 }
 0x120   :  { %v247_v17 = vpop.f32.mrb[1].mxu1  ;;  %v413_v25 = vmul.f32 %v411_v22, %v245_v15  ;;  %v403_v26 = vmul.f32 %v401_v18, %v245_v15  ;;  %v423_v29 = vmul.f32 %v421_v28, %v245_v15 }
 0x121   :  { %v439_v33 = vmul.f32 %v437_v27, %v247_v17  ;;  %v449_v34 = vmul.f32 %v447_v32, %v247_v17  ;;  %v459_v36 = vmul.f32 %v457_v35, %v247_v17 }
 0x122   :  { %394 = vperm.xlu1 %605, %v792_v38   ;;  %353 = vrot.lane.b32.xlu0 %v351_v16, %s731_s22 }
 0x126   :  { %379 = vrot.lane.b32.xlu1 %v377_v19, %s729_s2  ;;  %369 = vrot.lane.b32.xlu0 %v367_v20, %s730_s21 }
 0x127   :  { %606 = vset.pattern.permute.xlu1 %v732_v23 }
 0x12a   :  { %430 = vperm.xlu1 %606, %v792_v38   ;;  %389 = vrot.lane.b32.xlu0 %v387_v24, %s731_s22 }
 0x12e   :  { %415 = vrot.lane.b32.xlu1 %v413_v25, %s729_s2  ;;  %405 = vrot.lane.b32.xlu0 %v403_v26, %s730_s21  ;;  %v316_v30 = vpop.f32.mrb[2].mxu0 }
 0x12f   :  { %607 = vset.pattern.permute.xlu1 %v728_v5  ;;  %v528_v31 = vpop.f32.mrb[3].mxu0 }
 0x132   :  { %466 = vperm.xlu1 %607, %v792_v38   ;;  %425 = vrot.lane.b32.xlu0 %v423_v29, %s731_s22 }
 0x136   :  { %451 = vrot.lane.b32.xlu1 %v449_v34, %s729_s2  ;;  %441 = vrot.lane.b32.xlu0 %v439_v33, %s730_s21 }
 0x13a   :  { %461 = vrot.lane.b32.xlu0 %v459_v36, %s731_s22 }
 0x190   :  { %v334_v41 = vpop.permute.xlu0 %333  ;;  %v344_v38 = vpop.permute.xlu1 %343 }
 0x191   :  { %v336_v42 = vadd.f32 %v334_v41, %v326_v40 }
 0x193   :  { %v346_v43 = vadd.f32 %v344_v38, %v336_v42 }
 0x194   :  { %v354_v44 = vpop.permute.xlu0 %353 }
 0x195   :  { %v356_v45 = vadd.f32 %v354_v44, %v346_v43 }
 0x197   :  { %v362_v47 = vadd.f32 %v361_v46, %v356_v45 }
 0x198   :  { %v370_v48 = vpop.permute.xlu0 %369 }
 0x199   :  { %v372_v51 = vadd.f32 %v370_v48, %v362_v47 }
 0x19c   :  { %v390_v49 = vpop.permute.xlu0 %389 }
 0x1a0   :  { %v406_v52 = vpop.permute.xlu0 %405 }
 0x1a1   :  { %v395_v50 = vpop.permute.xlu1 %394 }
 0x1a2   :  { %v397_v55 = vmul.f32 %v395_v50, %v245_v15 }
 0x1a4   :  { %v426_v59 = vpop.permute.xlu0 %425 }
 0x1a5   :  { %v380_v53 = vpop.permute.xlu1 %379 }
 0x1a6   :  { %v382_v54 = vadd.f32 %v380_v53, %v372_v51 }
 0x1a8   :  { %v392_v56 = vadd.f32 %v390_v49, %v382_v54  ;;  %v442_v2 = vpop.permute.xlu0 %441 }
 0x1a9   :  { %v431_v57 = vpop.permute.xlu1 %430 }
 0x1aa   :  { %v398_v58 = vadd.f32 %v397_v55, %v392_v56  ;;  %v433_v63 = vmul.f32 %v431_v57, %v247_v17 }
 0x1ac   :  { %v408_v60 = vadd.f32 %v406_v52, %v398_v58  ;;  %v462_v7 = vpop.permute.xlu0 %461 }
 0x1ad   :  { %v416_v61 = vpop.permute.xlu1 %415 }
 0x1ae   :  { %v418_v62 = vadd.f32 %v416_v61, %v408_v60 }
 0x1b0   :  { %v428_v1 = vadd.f32 %v426_v59, %v418_v62 }
 0x1b1   :  { %v467_v3 = vpop.permute.xlu1 %466 }
 0x1b2   :  { %v434_v4 = vadd.f32 %v433_v63, %v428_v1  ;;  %v469_v8 = vmul.f32 %v467_v3, %v316_v30 }
 0x1b4   :  { %v444_v0 = vadd.f32 %v442_v2, %v434_v4 }
 0x1b5   :  { %v452_v5 = vpop.permute.xlu1 %451 }
 0x1b6   :  { %v454_v6 = vadd.f32 %v452_v5, %v444_v0 }
 0x1b8   :  { %v464_v9 = vadd.f32 %v462_v7, %v454_v6 }
 0x1ba   :  { %v470_v10 = vadd.f32 %v469_v8, %v464_v9 }
 0x1bc   :  { %v471_v11 = vmin.f32 %v470_v10, 0.0  ;;  %vm475_vm4 = vcmp.gt.f32.partialorder %v470_v10, 0.0 }
 0x1be   :  { %v472_v12 = vmul.f32 1.442695, %v471_v11 }
 0x1c0   :  { %609 = vpow2.f32 %v472_v12 }
 0x1ca   :  { %v610_v13 = vpop.eup %609 }
 0x1cb   :  { %v503_v14 = vadd.f32 -1.0, %v610_v13 }
 0x1cd   :  { %v476_v15 = vsel %vm475_vm4, %v470_v10, %v503_v14 }
 0x1ce   :  { %478 = vst.msk [vmem:[#allocation8] sm:$0xff] %vm477_vm3, %v476_v15 }
 0x1cf   :  { %688 = shalt.err (!%p685_p0)
}
 0x1d0   :  { %s689_s28 = scalar_lea.hbm %s848_s3, 128 }
 0x1d1   :  { %p690_p1 = scmp.ne.s32.totalorder %s848_s3, %s689_s28  ;;  %p693_p2 = scmp.lt.u32.totalorder %s689_s28, %s848_s3 }
 0x1d3   :  { %p695_p3 = pnand %p693_p2, %p690_p1 }
 0x1d5   :  { %698 = shalt.err (!%p695_p3)
}
 0x1d6   :  { %488 = dma.vmem_to_hbm [thread:$0]  %s486_s24, 128, %s848_s3, [#allocation4]  }
 0x1d7   :  { %703 = dma.done.wait [#allocation4], 128  }
 0x1d8   :  { %704 = vsyncadd [#allocation4], 4294967168 }
 0x1d9   :  { %492 = vsyncpa [#allocation3], 1 }
 0x1da   :  { %493 = vsyncpa [#allocation6], 1 }
 0x1db   :  { %494 = vsyncpa [#allocation4], 1 }

</bundles_post_ra>
